<compile_context>
chip_gen: v7x
topology: tpu7x:2x2x1
jax: 0.10.0
libtpu: 0.0.40
codegen_flags: <defaults>
</compile_context>

<pallas_src>
import jax
import jax.numpy as jnp
from jax.experimental import pallas as pl
from jax.experimental.pallas import tpu as pltpu


def _round_up(n, m):
    return ((n + m - 1) // m) * m


def _linear_tanh_kernel(x_ref, w_ref, b_ref, o_ref):
    # x_ref: (tm, C_in), w_ref: (C_in, C_out), b_ref: (1, C_out), o_ref: (tm, C_out)
    y = jnp.dot(x_ref[...], w_ref[...], preferred_element_type=jnp.float32)
    o_ref[...] = jnp.tanh(y + b_ref[...]).astype(o_ref.dtype)


def single_layer_nn_forward(x, weight, bias, targets=None, tm=None):
    """Pallas implementation of SingleLayerNN.forward (targets=None branch).

    Args:
      x:      (B, T, input_size) float32
      weight: (output_size, input_size) float32  -- like nn.Linear.weight
      bias:   (output_size,) float32             -- like nn.Linear.bias
      tm:     optional row-tile override (testing / tuning)
    Returns:
      (output, loss) with output of shape (B, T, output_size), loss=None.
    """
    B, T, C_in = x.shape
    C_out = weight.shape[0]
    BT = B * T

    # ---- row-tile sizing -----------------------------------------------
    if tm is None:
        TM_MAX = 2048                      # ~0.8 MiB/step at C_in=32, C_out=65
        num_blocks = max(1, -(-BT // TM_MAX))
        if BT >= 1024:
            num_blocks = max(num_blocks, 2)   # keep both v7x TensorCores busy
        tm = -(-BT // num_blocks)
    tm = _round_up(tm, 8)                  # sublane multiple

    grid = (pl.cdiv(BT, tm),)              # ragged last block handled by Pallas

    # ---- layout plumbing (no extra HBM passes over the big operands) ----
    x2d = x.reshape(BT, C_in)              # metadata-only reshape
    w_t = weight.T                         # (C_in, C_out): one-time tiny transpose
    b2d = bias.reshape(1, C_out)

    cost = pl.CostEstimate(
        flops=2 * BT * C_in * C_out,
        transcendentals=BT * C_out,
        bytes_accessed=4 * (BT * C_in + C_in * C_out + C_out + BT * C_out),
    )

    out2d = pl.pallas_call(
        _linear_tanh_kernel,
        out_shape=jax.ShapeDtypeStruct((BT, C_out), jnp.float32),
        grid=grid,
        in_specs=[
            pl.BlockSpec((tm, C_in), lambda i: (i, 0)),     # x rows, tiled/pipelined
            pl.BlockSpec((C_in, C_out), lambda i: (0, 0)),  # weight, resident
            pl.BlockSpec((1, C_out), lambda i: (0, 0)),     # bias, resident
        ],
        out_specs=pl.BlockSpec((tm, C_out), lambda i: (i, 0)),
        compiler_params=pltpu.CompilerParams(
            dimension_semantics=("parallel",),
        ),
        cost_estimate=cost,
    )(x2d, w_t, b2d)

    # TODO(synk): cross-entropy loss branch (targets is not None) not implemented;
    # the call path exercised here (targets=None) returns loss=None.
    loss = None
    return out2d.reshape(B, T, C_out), loss


if __name__ == "__main__":
    # Small shapes consistent with the module: batch=2, seq=8, input_size=32,
    # output_size=65 (module default).
    B, T, INPUT_SIZE, OUTPUT_SIZE = 2, 8, 32, 65

    key = jax.random.PRNGKey(0)
    k_x, k_w, k_b, k_x2 = jax.random.split(key, 4)

    # Deterministic parameter init (same shapes/ranges as nn.Linear default init).
    bound = 1.0 / jnp.sqrt(jnp.float32(INPUT_SIZE))
    weight = jax.random.uniform(
        k_w, (OUTPUT_SIZE, INPUT_SIZE), minval=-bound, maxval=bound,
        dtype=jnp.float32)
    bias = jax.random.uniform(
        k_b, (OUTPUT_SIZE,), minval=-bound, maxval=bound, dtype=jnp.float32)

    # Example input (forward() accepts any float (B, T, input_size) tensor).
    x = jax.random.normal(k_x, (B, T, INPUT_SIZE), dtype=jnp.float32)

    out, loss = single_layer_nn_forward(x, weight, bias)
    out = jax.block_until_ready(out)

    ref = jnp.tanh(jnp.einsum("btc,oc->bto", x, weight) + bias)
    assert out.shape == (B, T, OUTPUT_SIZE)
    assert loss is None
    assert jnp.allclose(out, ref, atol=1e-5, rtol=1e-5)

    # Ragged-tail check: BT % tm != 0 exercises the masked writeback of the
    # partial last row block (no padded-row garbage may leak into the output).
    x_ragged = jax.random.normal(k_x2, (B, 5, INPUT_SIZE), dtype=jnp.float32)
    out_r, _ = single_layer_nn_forward(x_ragged, weight, bias, tm=8)
    out_r = jax.block_until_ready(out_r)
    ref_r = jnp.tanh(jnp.einsum("btc,oc->bto", x_ragged, weight) + bias)
    assert out_r.shape == (B, 5, OUTPUT_SIZE)
    assert jnp.allclose(out_r, ref_r, atol=1e-5, rtol=1e-5)

    print("KERNEL_OK")
</pallas_src>

<mosaic_0001>
module attributes {stable_mosaic.version = 11 : i64} {
  func.func @_linear_tanh_kernel(%arg0: i32, %arg1: memref<16x32xf32, #tpu.memory_space<vmem>>, %arg2: memref<32x65xf32, #tpu.memory_space<vmem>>, %arg3: memref<1x65xf32, #tpu.memory_space<vmem>>, %arg4: memref<16x65xf32, #tpu.memory_space<vmem>>) attributes {dimension_semantics = [#tpu.dimension_semantics<parallel>], iteration_bounds = array<i64: 1>, scalar_prefetch = 0 : i64, scratch_operands = 0 : i64, tpu.core_type = #tpu.core_type<tc>, window_params = [{transform_indices = @transform_0, window_bounds = array<i64: 16, 32>}, {pipeline_mode = #tpu.pipeline_mode<synchronous>, transform_indices = @transform_1, window_bounds = array<i64: 32, 65>}, {pipeline_mode = #tpu.pipeline_mode<synchronous>, transform_indices = @transform_2, window_bounds = array<i64: 1, 65>}, {transform_indices = @transform_3, window_bounds = array<i64: 16, 65>}]} {
    %c0 = arith.constant 0 : index
    %c0_0 = arith.constant 0 : index
    %0 = vector.load %arg1[%c0, %c0_0] : memref<16x32xf32, #tpu.memory_space<vmem>>, vector<16x32xf32>
    %c0_1 = arith.constant 0 : index
    %c0_2 = arith.constant 0 : index
    %1 = vector.load %arg2[%c0_1, %c0_2] : memref<32x65xf32, #tpu.memory_space<vmem>>, vector<32x65xf32>
    %cst = arith.constant dense<0.000000e+00> : vector<16x65xf32>
    %2 = tpu.matmul %0, %1, %cst {dimension_numbers = #tpu.dot_dimension_numbers<[1], [0], [0], [1], [0, 0, 1, 1], [], []>} : vector<16x32xf32>, vector<32x65xf32>, vector<16x65xf32> -> vector<16x65xf32>
    %c0_3 = arith.constant 0 : index
    %c0_4 = arith.constant 0 : index
    %3 = vector.load %arg3[%c0_3, %c0_4] : memref<1x65xf32, #tpu.memory_space<vmem>>, vector<1x65xf32>
    %4 = vector.broadcast %3 : vector<1x65xf32> to vector<16x65xf32>
    %5 = arith.addf %2, %4 : vector<16x65xf32>
    %6 = math.tanh %5 : vector<16x65xf32>
    %c0_5 = arith.constant 0 : index
    %c0_6 = arith.constant 0 : index
    %7 = vector.load %arg4[%c0_5, %c0_6] : memref<16x65xf32, #tpu.memory_space<vmem>>, vector<16x65xf32>
    tpu.vector_store %arg4[%c0_5, %c0_6], %6 {strides = array<i32>} : memref<16x65xf32, #tpu.memory_space<vmem>>, vector<16x65xf32>,
    return
  }
  func.func @transform_0(%arg0: i32) -> (i32, i32) {
    %c0_i32 = arith.constant 0 : i32
    %c0_i32_0 = arith.constant 0 : i32
    return %arg0, %c0_i32 : i32, i32
  }
  func.func @transform_1(%arg0: i32) -> (i32, i32) {
    %c0_i32 = arith.constant 0 : i32
    %c0_i32_0 = arith.constant 0 : i32
    %c0_i32_1 = arith.constant 0 : i32
    return %c0_i32, %c0_i32_0 : i32, i32
  }
  func.func @transform_2(%arg0: i32) -> (i32, i32) {
    %c0_i32 = arith.constant 0 : i32
    %c0_i32_0 = arith.constant 0 : i32
    %c0_i32_1 = arith.constant 0 : i32
    return %c0_i32, %c0_i32_0 : i32, i32
  }
  func.func @transform_3(%arg0: i32) -> (i32, i32) {
    %c0_i32 = arith.constant 0 : i32
    %c0_i32_0 = arith.constant 0 : i32
    return %arg0, %c0_i32 : i32, i32
  }
}

</mosaic_0001>

<bundles_post_ra>
// kernel: tpu_custom_call.1
= control target key start
LH: loop header
LB: loop body
LE: loop exit
PB: predicated region body
PF: predicated region fallthrough
CT: control target
= control target key end

     0   :  { %8 = vsyncpa [#allocation3], 0  ;;  %s343_s0 = inlined_call_operand.hbm [shape: f32[16,32], index: 0, kind: input, shape index: {}]   ;;  %s344_s1 = inlined_call_operand.hbm [shape: f32[32,65], index: 1, kind: input, shape index: {}]   ;;  %s345_s2 = inlined_call_operand.vmem [shape: f32[1,65], index: 2, kind: input, shape index: {}]   ;;  %s346_s3 = inlined_call_operand.hbm [shape: f32[16,65], index: 3, kind: output, shape index: {}]  }
   0x1   :  { %9 = vsyncpa [#allocation6], 0 }
   0x2   :  { %10 = vsyncpa [#allocation4], 0  ;;  %s270_s12 = smov [#allocation2]   ;;  %s198_s16 = scalar_lea.hbm %s343_s0, 256 }
   0x3   :  { %s16_s13 = sshll.u32 %s270_s12, 4  ;;  %p199_p0 = scmp.ne.s32.totalorder %s343_s0, %s198_s16  ;;  %s17_s13 = int_to_ptr.vmem [resolvable:$true] %s16_s13 }
   0x4   :  { %p202_p1 = scmp.lt.u32.totalorder %s198_s16, %s343_s0 }
   0x6   :  { %p204_p2 = pnand %p202_p1, %p199_p0 }
   0x8   :  { %207 = shalt.err (!%p204_p2)
}
   0x9   :  { %s208_s21 = scalar_lea.vmem %s17_s13, 256  ;;  %p213_p4 = scmp.lt.s32.totalorder %s17_s13, %s17_s13 }
   0xa   :  { %p209_p3 = scmp.ne.s32.totalorder %s17_s13, %s208_s21  ;;  %p214_p5 = scmp.lt.s32.totalorder %s208_s21, %s208_s21 }
   0xc   :  { %p215_p6 = por %p214_p5, %p213_p4 }
   0xe   :  { %p216_p7 = pnand %p215_p6, %p209_p3 }
  0x10   :  { %219 = shalt.err (!%p216_p7)
}
  0x11   :  { %s271_s22 = smov 128   ;;  %s272_s23 = smov 8  }
  0x12   :  { %22 = dma.hbm_to_vmem [thread:$0]  %s343_s0, 256, %s17_s13, [#allocation3], %s271_s22, %s271_s22, %s272_s23  }
  0x13   :  { %s273_s26 = smov [#allocation5]   ;;  %s220_s30 = scalar_lea.hbm %s344_s1, 512 }
  0x14   :  { %s28_s27 = sshll.u32 %s273_s26, 4  ;;  %p221_p8 = scmp.ne.s32.totalorder %s344_s1, %s220_s30  ;;  %s29_s27 = int_to_ptr.vmem [resolvable:$true] %s28_s27 }
  0x15   :  { %p224_p9 = scmp.lt.u32.totalorder %s220_s30, %s344_s1 }
  0x17   :  { %p226_p10 = pnand %p224_p9, %p221_p8 }
  0x19   :  { %229 = shalt.err (!%p226_p10)
}
  0x1a   :  { %s230_s8 = scalar_lea.vmem %s29_s27, 512  ;;  %p235_p12 = scmp.lt.s32.totalorder %s29_s27, %s29_s27 }
  0x1b   :  { %p231_p11 = scmp.ne.s32.totalorder %s29_s27, %s230_s8  ;;  %p236_p13 = scmp.lt.s32.totalorder %s230_s8, %s230_s8 }
  0x1d   :  { %p237_p0 = por %p236_p13, %p235_p12 }
  0x1f   :  { %p238_p1 = pnand %p237_p0, %p231_p11 }
  0x21   :  { %241 = shalt.err (!%p238_p1)
}
  0x22   :  { %34 = dma.hbm_to_vmem [thread:$0]  %s344_s1, 512, %s29_s27, [#allocation6], %s271_s22, %s271_s22, %s272_s23  }
  0x23   :  { %264 = dma.done.wait [#allocation3], 256  }
  0x24   :  { %265 = vsyncadd [#allocation3], 4294967040 }
  0x25   :  { %266 = dma.done.wait [#allocation6], 512  }
  0x26   :  { %267 = vsyncadd [#allocation6], 4294966784  ;;  %vm56_vm0 = vcmask 261120   ;;  %v45_v0 = vld [vmem:[#allocation5] sm:$0xff]  ;;  %v46_v1 = vld [vmem:[#allocation5 + $0x8] sm:$0xff]  ;;  %s274_s11 = smov [#allocation7]  }
  0x27   :  { %v47_v2 = vld [vmem:[#allocation5 + $0x10] sm:$0xff]  ;;  %v181_v3 = vpack.c.bf16 %v46_v1, %v45_v0  ;;  %v48_v4 = vld [vmem:[#allocation5 + $0x18] sm:$0xff]  ;;  %s148_s12 = sshll.u32 %s274_s11, 4  ;;  %vm140_vm1 = vcmask 531456   ;;  %s149_s12 = int_to_ptr.vmem [resolvable:$true] %s148_s12 }
  0x28   :  { %v43_v5 = vld [vmem:[#allocation2] sm:$0xff]  ;;  %v185_v6 = vpack.c.bf16 %v48_v4, %v47_v2  ;;  %v44_v7 = vld [vmem:[#allocation2 + $0x8] sm:$0xff]  ;;  %s242_s13 = scalar_lea.vmem %s149_s12, 256  ;;  %p247_p3 = scmp.lt.s32.totalorder %s149_s12, %s149_s12 }
  0x29   :  { %178 = vmatprep.mubr.msk.f32.mxu0 %vm56_vm0, %v43_v5  ;;  %182 = vmatprep.subr.bf16.mxu0 %v181_v3  ;;  %v161_v8 = vld [vmem:[%s345_s2] ss:$0 sm:$0xff]  ;;  %p243_p2 = scmp.ne.s32.totalorder %s149_s12, %s242_s13  ;;  %p248_p4 = scmp.lt.s32.totalorder %s242_s13, %s242_s13 }
  0x2a   :  { %184 = vmatpush3.bf16.msra.mxu0 %v181_v3 }
  0x2b   :  { %186 = vmatprep.subr.bf16.mxu0 %v185_v6  ;;  %p249_p5 = por %p248_p4, %p247_p3 }
  0x2d   :  { %p250_p6 = pnand %p249_p5, %p243_p2 }
  0x2e   :  { %188 = vmatpush3.bf16.msra.mxu0 %v185_v6 }
  0x31   :  { %179 = vmatmul.mubr.msk.f32.vlgmr.msra.gmra.mrb[0].mxu0 %vm56_vm0, %v44_v7 }
 0x104   :  { %v180_v9 = vpop.f32.mrb[0].mxu0 }
 0x105   :  { %v135_v10 = vadd.f32 %v180_v9, %v161_v8  ;;  %v129_v11 = vpop.f32.mrb[1].mxu0 }
 0x106   :  { %v130_v12 = vadd.f32 %v161_v8, %v129_v11 }
 0x107   :  { %194 = vtanh.f32 %v135_v10 }
 0x108   :  { %196 = vtanh.f32 %v130_v12 }
 0x111   :  { %v195_v13 = vpop.eup %194 }
 0x112   :  { %v197_v14 = vpop.eup %196  ;;  %142 = vst.msk [vmem:[#allocation7 + $0x8] sm:$0xff] %vm140_vm1, %v195_v13 }
 0x113   :  { %141 = vst.msk [vmem:[#allocation7] sm:$0xff] %vm140_vm1, %v197_v14 }
 0x114   :  { %253 = shalt.err (!%p250_p6)
}
 0x115   :  { %s254_s15 = scalar_lea.hbm %s346_s3, 256 }
 0x116   :  { %p255_p7 = scmp.ne.s32.totalorder %s346_s3, %s254_s15  ;;  %p258_p8 = scmp.lt.u32.totalorder %s254_s15, %s346_s3 }
 0x118   :  { %p260_p9 = pnand %p258_p8, %p255_p7 }
 0x11a   :  { %263 = shalt.err (!%p260_p9)
}
 0x11b   :  { %154 = dma.vmem_to_hbm [thread:$0]  %s149_s12, 256, %s346_s3, [#allocation4], %s271_s22, %s271_s22, %s272_s23  }
 0x11c   :  { %268 = dma.done.wait [#allocation4], 256  }
 0x11d   :  { %269 = vsyncadd [#allocation4], 4294967040 }
 0x11e   :  { %158 = vsyncpa [#allocation3], 1 }
 0x11f   :  { %159 = vsyncpa [#allocation6], 1 }
 0x120   :  { %160 = vsyncpa [#allocation4], 1 }

</bundles_post_ra>
